<compile_context>
chip_gen: v7x
topology: tpu7x:2x2x1
jax: 0.10.0
libtpu: 0.0.40
codegen_flags: <defaults>
</compile_context>

<pallas_src>
import functools

import jax
import jax.numpy as jnp
import numpy as np
from jax.experimental import pallas as pl
from jax.experimental.pallas import tpu as pltpu


def _basic_block_kernel(x_ref, w1_ref, w2_ref, s1_ref, b1_ref, b2_ref,
                        o_ref, op_ref, *, H, WC):
    """Fused: relu(bn1(x)) -> conv3x3 -> relu(. + b2) -> conv3x3 -> + x.

    The block holds NB images stacked along rows: (M, W*C) with M = NB*H and
    W*C = 128 lane-dense.  Each 3x3 conv is ONE bf16 MXU matmul
    (M, 3*WC) @ (3*WC, WC) with f32 accumulation; the H-direction taps are
    row-shifted copies written into the three lane-aligned segments of the
    shared bf16 operand scratch `op_ref`.
    """
    x = x_ref[0].astype(jnp.float32)                      # (M, WC)
    M = x.shape[0]

    # Per-row masks: the first/last row of each stacked image has no valid
    # above/below neighbour (this also zeroes the roll wrap-around rows).
    row = jax.lax.broadcasted_iota(jnp.int32, (M, 1), 0)
    has_above = (row % H) != 0
    has_below = (row % H) != (H - 1)

    def conv3x3(act, w_ref):
        # Center taps (kh = 1).
        op_ref[:, WC:2 * WC] = act.astype(jnp.bfloat16)
        # Above taps (kh = 0): output row r sees act[r-1]; zero at image tops.
        above = jnp.where(has_above, jnp.roll(act, 1, axis=0), 0.0)
        op_ref[:, :WC] = above.astype(jnp.bfloat16)
        # Below taps (kh = 2): output row r sees act[r+1]; zero at image bottoms.
        below = jnp.where(has_below, jnp.roll(act, -1, axis=0), 0.0)
        op_ref[:, 2 * WC:] = below.astype(jnp.bfloat16)
        # One MXU matmul: bf16 operands, f32 accumulation.
        return jnp.dot(op_ref[...], w_ref[...],
                       preferred_element_type=jnp.float32)

    # bn1 affine + ReLU (f32 VPU math).
    act1 = jnp.maximum(x * s1_ref[...] + b1_ref[...], 0.0)
    # conv1 -- bn2's per-channel scale is pre-folded into w1's columns.
    conv1 = conv3x3(act1, w1_ref)
    # bn2 bias + ReLU.  dropRate == 0.0 -> F.dropout is the identity.
    # TODO(synk): dropout (dropRate > 0) and convShortcut (stride > 1 or
    # in_planes != out_planes) paths are not instantiated in this config.
    act2 = jnp.maximum(conv1 + b2_ref[...], 0.0)
    conv2 = conv3x3(act2, w2_ref)

    # Residual add (equalInOut=True -> add the original input x).
    o_ref[0] = (x + conv2).astype(o_ref.dtype)


def build_banded_weight(w_hwio, width):
    """Fold the W-direction 3x3 taps into a banded (3*W*Cin, W*Cout) matrix.

    big[kh*W*Cin + w_in*Cin + ci, w_out*Cout + co] =
        w[kh, (w_in - w_out) + 1, ci, co]   if |w_in - w_out| <= 1 else 0
    which realizes 'same' padding along W for free.
    """
    w = np.asarray(w_hwio, dtype=np.float32)       # (3, 3, Cin, Cout)
    _, _, cin, cout = w.shape
    big = np.zeros((3, width, cin, width, cout), dtype=np.float32)
    for kh in range(3):
        for kw in range(3):
            dw = kw - 1
            for w_out in range(width):
                w_in = w_out + dw
                if 0 <= w_in < width:
                    big[kh, w_in, :, w_out, :] = w[kh, kw]
    return jnp.asarray(big.reshape(3 * width * cin, width * cout))


def basic_block_forward_flat(x_blk, w1_big, w2_big, s1, b1, b2, *, H):
    G, M, WC = x_blk.shape
    K = w1_big.shape[0]                     # 3 * WC
    kernel = functools.partial(_basic_block_kernel, H=H, WC=WC)
    return pl.pallas_call(
        kernel,
        out_shape=jax.ShapeDtypeStruct((G, M, WC), x_blk.dtype),
        grid_spec=pltpu.PrefetchScalarGridSpec(
            num_scalar_prefetch=0,
            grid=(G,),
            in_specs=[
                pl.BlockSpec((1, M, WC), lambda g: (g, 0, 0)),   # x block (NB imgs)
                pl.BlockSpec((K, WC), lambda g: (0, 0)),         # banded w1 (bf16, bn2 scale folded)
                pl.BlockSpec((K, WC), lambda g: (0, 0)),         # banded w2 (bf16)
                pl.BlockSpec((1, WC), lambda g: (0, 0)),         # bn1 scale (lane-tiled)
                pl.BlockSpec((1, WC), lambda g: (0, 0)),         # bn1 bias
                pl.BlockSpec((1, WC), lambda g: (0, 0)),         # bn2 bias
            ],
            out_specs=pl.BlockSpec((1, M, WC), lambda g: (g, 0, 0)),
            scratch_shapes=[pltpu.VMEM((M, 3 * WC), jnp.bfloat16)],  # conv operand
        ),
        compiler_params=pltpu.CompilerParams(
            dimension_semantics=("parallel",)),   # no cross-step state -> safe
    )(x_blk, w1_big, w2_big, s1, b1, b2)


def basic_block_forward(x_nchw, w1_oihw, w2_oihw, scale1, bias1, scale2, bias2):
    """Wrapper: NCHW/OIHW (PyTorch) -> lane-dense (G, NB*H, W*C) -> NCHW."""
    N, Cin, H, W = x_nchw.shape
    Cout = w1_oihw.shape[0]
    assert Cin == Cout, "only the equalInOut / stride=1 config is implemented"
    WC = W * Cin

    # Lane-dense activations: (N, H, W*C).
    x_flat = jnp.transpose(x_nchw, (0, 2, 3, 1)).reshape(N, H, WC)

    # Stack NB images per grid step so each matmul runs with M = NB*H rows
    # (largest divisor of N with NB*H <= 256 -> fills MXU rows, amortizes the
    # per-grid-step overhead).
    NB = 1
    for cand in range(N, 0, -1):
        if N % cand == 0 and cand * H <= 256:
            NB = cand
            break
    G = N // NB
    M = NB * H
    x_blk = x_flat.reshape(G, M, WC)

    # Banded weights (W-direction taps folded in); bf16 for the MXU.
    w1_hwio = jnp.transpose(w1_oihw, (2, 3, 1, 0))  # (3,3,Cin,Cout)
    w2_hwio = jnp.transpose(w2_oihw, (2, 3, 1, 0))
    w1_big = build_banded_weight(w1_hwio, W)        # (3*WC, WC) f32
    w2_big = build_banded_weight(w2_hwio, W)
    # Fold bn2's per-channel scale into w1's output columns (free, wrapper-side).
    w1_big = (w1_big * jnp.tile(scale2, W)[None, :]).astype(jnp.bfloat16)
    w2_big = w2_big.astype(jnp.bfloat16)

    # Per-channel BN params tiled across W so they broadcast on the lane axis.
    s1 = jnp.tile(scale1, W).reshape(1, WC)
    b1 = jnp.tile(bias1, W).reshape(1, WC)
    b2 = jnp.tile(bias2, W).reshape(1, WC)

    out_blk = basic_block_forward_flat(x_blk, w1_big, w2_big, s1, b1, b2, H=H)
    out = out_blk.reshape(N, H, W, Cout)
    return jnp.transpose(out, (0, 3, 1, 2))


def reference_forward(x, w1_oihw, w2_oihw, scale1, bias1, scale2, bias2):
    """Pure-JAX reference mirroring the PyTorch forward (NCHW, eval-mode BN)."""
    bc = lambda v: v[None, :, None, None]
    act1 = jnp.maximum(x * bc(scale1) + bc(bias1), 0.0)
    conv1 = jax.lax.conv_general_dilated(
        act1, w1_oihw, (1, 1), ((1, 1), (1, 1)),
        dimension_numbers=("NCHW", "OIHW", "NCHW"),
        precision=jax.lax.Precision.HIGHEST)
    act2 = jnp.maximum(conv1 * bc(scale2) + bc(bias2), 0.0)
    conv2 = jax.lax.conv_general_dilated(
        act2, w2_oihw, (1, 1), ((1, 1), (1, 1)),
        dimension_numbers=("NCHW", "OIHW", "NCHW"),
        precision=jax.lax.Precision.HIGHEST)
    return x + conv2


if __name__ == "__main__":
    key = jax.random.PRNGKey(0)
    ks = jax.random.split(key, 12)

    N, C, H, W = 2, 8, 16, 16          # in_planes = out_planes = 8, stride = 1
    EPS = 1e-5

    x = jax.random.normal(ks[0], (N, C, H, W), jnp.float32)
    w1 = 0.1 * jax.random.normal(ks[1], (C, C, 3, 3), jnp.float32)   # OIHW
    w2 = 0.1 * jax.random.normal(ks[2], (C, C, 3, 3), jnp.float32)   # OIHW

    gamma1 = 1.0 + 0.1 * jax.random.normal(ks[3], (C,), jnp.float32)
    beta1 = 0.1 * jax.random.normal(ks[4], (C,), jnp.float32)
    mean1 = 0.1 * jax.random.normal(ks[5], (C,), jnp.float32)
    var1 = jnp.abs(jax.random.normal(ks[6], (C,), jnp.float32)) + 0.5

    gamma2 = 1.0 + 0.1 * jax.random.normal(ks[7], (C,), jnp.float32)
    beta2 = 0.1 * jax.random.normal(ks[8], (C,), jnp.float32)
    mean2 = 0.1 * jax.random.normal(ks[9], (C,), jnp.float32)
    var2 = jnp.abs(jax.random.normal(ks[10], (C,), jnp.float32)) + 0.5

    # Fold eval-mode BatchNorm into per-channel scale/bias.
    scale1 = gamma1 / jnp.sqrt(var1 + EPS)
    bias1 = beta1 - mean1 * scale1
    scale2 = gamma2 / jnp.sqrt(var2 + EPS)
    bias2 = beta2 - mean2 * scale2

    out = basic_block_forward(x, w1, w2, scale1, bias1, scale2, bias2)
    out = jax.block_until_ready(out)

    ref = reference_forward(x, w1, w2, scale1, bias1, scale2, bias2)
    # bf16 MXU operands with f32 accumulation -> loosen tolerance vs the
    # HIGHEST-precision f32 reference.
    np.testing.assert_allclose(np.asarray(out), np.asarray(ref),
                               rtol=3e-2, atol=3e-2)
    print("KERNEL_OK")
</pallas_src>

<mosaic_0001>
module attributes {stable_mosaic.version = 11 : i64} {
  func.func @_basic_block_kernel(%arg0: i32, %arg1: memref<1x32x128xf32, #tpu.memory_space<vmem>>, %arg2: memref<384x128xbf16, #tpu.memory_space<vmem>>, %arg3: memref<384x128xbf16, #tpu.memory_space<vmem>>, %arg4: memref<1x128xf32, #tpu.memory_space<vmem>>, %arg5: memref<1x128xf32, #tpu.memory_space<vmem>>, %arg6: memref<1x128xf32, #tpu.memory_space<vmem>>, %arg7: memref<1x32x128xf32, #tpu.memory_space<vmem>>, %arg8: memref<32x384xbf16, #tpu.memory_space<vmem>>) attributes {dimension_semantics = [#tpu.dimension_semantics<parallel>], iteration_bounds = array<i64: 1>, scalar_prefetch = 0 : i64, scratch_operands = 1 : i64, tpu.core_type = #tpu.core_type<tc>, window_params = [{transform_indices = @transform_0, window_bounds = array<i64: 1, 32, 128>}, {pipeline_mode = #tpu.pipeline_mode<synchronous>, transform_indices = @transform_1, window_bounds = array<i64: 384, 128>}, {pipeline_mode = #tpu.pipeline_mode<synchronous>, transform_indices = @transform_2, window_bounds = array<i64: 384, 128>}, {pipeline_mode = #tpu.pipeline_mode<synchronous>, transform_indices = @transform_3, window_bounds = array<i64: 1, 128>}, {pipeline_mode = #tpu.pipeline_mode<synchronous>, transform_indices = @transform_4, window_bounds = array<i64: 1, 128>}, {pipeline_mode = #tpu.pipeline_mode<synchronous>, transform_indices = @transform_5, window_bounds = array<i64: 1, 128>}, {transform_indices = @transform_6, window_bounds = array<i64: 1, 32, 128>}]} {
    %c0 = arith.constant 0 : index
    %c0_0 = arith.constant 0 : index
    %c0_1 = arith.constant 0 : index
    %0 = vector.load %arg1[%c0, %c0_0, %c0_1] : memref<1x32x128xf32, #tpu.memory_space<vmem>>, vector<1x32x128xf32>
    %1 = vector.shape_cast %0 : vector<1x32x128xf32> to vector<32x128xf32>
    %2 = tpu.iota {dimensions = array<i32: 0>} : vector<32x1xi32>
    %c16_i32 = arith.constant 16 : i32
    %c0_i32 = arith.constant 0 : i32
    %3 = arith.cmpi eq, %c16_i32, %c0_i32 : i32
    %c1_i32 = arith.constant 1 : i32
    %4 = arith.select %3, %c1_i32, %c16_i32 : i32
    %5 = vector.broadcast %4 : i32 to vector<32x1xi32>
    %6 = arith.remsi %2, %5 : vector<32x1xi32>
    %c0_i32_2 = arith.constant 0 : i32
    %7 = vector.broadcast %c0_i32_2 : i32 to vector<32x1xi32>
    %8 = arith.cmpi ne, %6, %7 : vector<32x1xi32>
    %c0_i32_3 = arith.constant 0 : i32
    %9 = vector.broadcast %c0_i32_3 : i32 to vector<32x1xi32>
    %10 = arith.cmpi slt, %6, %9 : vector<32x1xi32>
    %c0_i32_4 = arith.constant 0 : i32
    %11 = arith.cmpi slt, %4, %c0_i32_4 : i32
    %12 = vector.broadcast %11 : i1 to vector<32x1xi1>
    %13 = vector.broadcast %12 : vector<32x1xi1> to vector<32x1xi1>
    %14 = arith.xori %10, %13 : vector<32x1xi1>
    %15 = arith.andi %14, %8 : vector<32x1xi1>
    %16 = vector.broadcast %4 : i32 to vector<32x1xi32>
    %17 = arith.addi %6, %16 : vector<32x1xi32>
    %18 = arith.select %15, %17, %6 : vector<32x1xi1>, vector<32x1xi32>
    %c0_i32_5 = arith.constant 0 : i32
    %19 = vector.broadcast %c0_i32_5 : i32 to vector<32x1xi32>
    %20 = arith.cmpi ne, %18, %19 : vector<32x1xi32>
    %c16_i32_6 = arith.constant 16 : i32
    %c0_i32_7 = arith.constant 0 : i32
    %21 = arith.cmpi eq, %c16_i32_6, %c0_i32_7 : i32
    %c1_i32_8 = arith.constant 1 : i32
    %22 = arith.select %21, %c1_i32_8, %c16_i32_6 : i32
    %23 = vector.broadcast %22 : i32 to vector<32x1xi32>
    %24 = arith.remsi %2, %23 : vector<32x1xi32>
    %c0_i32_9 = arith.constant 0 : i32
    %25 = vector.broadcast %c0_i32_9 : i32 to vector<32x1xi32>
    %26 = arith.cmpi ne, %24, %25 : vector<32x1xi32>
    %c0_i32_10 = arith.constant 0 : i32
    %27 = vector.broadcast %c0_i32_10 : i32 to vector<32x1xi32>
    %28 = arith.cmpi slt, %24, %27 : vector<32x1xi32>
    %c0_i32_11 = arith.constant 0 : i32
    %29 = arith.cmpi slt, %22, %c0_i32_11 : i32
    %30 = vector.broadcast %29 : i1 to vector<32x1xi1>
    %31 = vector.broadcast %30 : vector<32x1xi1> to vector<32x1xi1>
    %32 = arith.xori %28, %31 : vector<32x1xi1>
    %33 = arith.andi %32, %26 : vector<32x1xi1>
    %34 = vector.broadcast %22 : i32 to vector<32x1xi32>
    %35 = arith.addi %24, %34 : vector<32x1xi32>
    %36 = arith.select %33, %35, %24 : vector<32x1xi1>, vector<32x1xi32>
    %c15_i32 = arith.constant 15 : i32
    %37 = vector.broadcast %c15_i32 : i32 to vector<32x1xi32>
    %38 = arith.cmpi ne, %36, %37 : vector<32x1xi32>
    %c0_12 = arith.constant 0 : index
    %c0_13 = arith.constant 0 : index
    %39 = vector.load %arg4[%c0_12, %c0_13] : memref<1x128xf32, #tpu.memory_space<vmem>>, vector<1x128xf32>
    %40 = vector.broadcast %39 : vector<1x128xf32> to vector<32x128xf32>
    %41 = arith.mulf %1, %40 : vector<32x128xf32>
    %c0_14 = arith.constant 0 : index
    %c0_15 = arith.constant 0 : index
    %42 = vector.load %arg5[%c0_14, %c0_15] : memref<1x128xf32, #tpu.memory_space<vmem>>, vector<1x128xf32>
    %43 = vector.broadcast %42 : vector<1x128xf32> to vector<32x128xf32>
    %44 = arith.addf %41, %43 : vector<32x128xf32>
    %cst = arith.constant 0.000000e+00 : f32
    %45 = vector.broadcast %cst : f32 to vector<32x128xf32>
    %46 = arith.maximumf %44, %45 : vector<32x128xf32>
    %47 = arith.truncf %46 : vector<32x128xf32> to vector<32x128xbf16>
    %c0_16 = arith.constant 0 : index
    %c128 = arith.constant 128 : index
    %48 = vector.load %arg8[%c0_16, %c128] : memref<32x384xbf16, #tpu.memory_space<vmem>>, vector<32x128xbf16>
    tpu.vector_store %arg8[%c0_16, %c128], %47 {strides = array<i32>} : memref<32x384xbf16, #tpu.memory_space<vmem>>, vector<32x128xbf16>,
    %49 = vector.extract_strided_slice %46 {offsets = [31, 0], sizes = [1, 128], strides = [1, 1]} : vector<32x128xf32> to vector<1x128xf32>
    %50 = vector.extract_strided_slice %46 {offsets = [0, 0], sizes = [31, 128], strides = [1, 1]} : vector<32x128xf32> to vector<31x128xf32>
    %51 = tpu.concatenate %49, %50 in 0 : vector<1x128xf32>, vector<31x128xf32> -> vector<32x128xf32>
    %cst_17 = arith.constant 0.000000e+00 : f32
    %52 = vector.shape_cast %20 : vector<32x1xi1> to vector<32x1xi1>
    %53 = vector.broadcast %52 : vector<32x1xi1> to vector<32x128xi1>
    %54 = vector.broadcast %cst_17 : f32 to vector<32x128xf32>
    %55 = arith.select %53, %51, %54 : vector<32x128xi1>, vector<32x128xf32>
    %56 = arith.truncf %55 : vector<32x128xf32> to vector<32x128xbf16>
    %c0_18 = arith.constant 0 : index
    %c0_19 = arith.constant 0 : index
    %57 = vector.load %arg8[%c0_18, %c0_19] : memref<32x384xbf16, #tpu.memory_space<vmem>>, vector<32x128xbf16>
    tpu.vector_store %arg8[%c0_18, %c0_19], %56 {strides = array<i32>} : memref<32x384xbf16, #tpu.memory_space<vmem>>, vector<32x128xbf16>,
    %58 = vector.extract_strided_slice %46 {offsets = [1, 0], sizes = [31, 128], strides = [1, 1]} : vector<32x128xf32> to vector<31x128xf32>
    %59 = vector.extract_strided_slice %46 {offsets = [0, 0], sizes = [1, 128], strides = [1, 1]} : vector<32x128xf32> to vector<1x128xf32>
    %60 = tpu.concatenate %58, %59 in 0 : vector<31x128xf32>, vector<1x128xf32> -> vector<32x128xf32>
    %cst_20 = arith.constant 0.000000e+00 : f32
    %61 = vector.shape_cast %38 : vector<32x1xi1> to vector<32x1xi1>
    %62 = vector.broadcast %61 : vector<32x1xi1> to vector<32x128xi1>
    %63 = vector.broadcast %cst_20 : f32 to vector<32x128xf32>
    %64 = arith.select %62, %60, %63 : vector<32x128xi1>, vector<32x128xf32>
    %65 = arith.truncf %64 : vector<32x128xf32> to vector<32x128xbf16>
    %c0_21 = arith.constant 0 : index
    %c256 = arith.constant 256 : index
    %66 = vector.load %arg8[%c0_21, %c256] : memref<32x384xbf16, #tpu.memory_space<vmem>>, vector<32x128xbf16>
    tpu.vector_store %arg8[%c0_21, %c256], %65 {strides = array<i32>} : memref<32x384xbf16, #tpu.memory_space<vmem>>, vector<32x128xbf16>,
    %c0_22 = arith.constant 0 : index
    %c0_23 = arith.constant 0 : index
    %67 = vector.load %arg8[%c0_22, %c0_23] : memref<32x384xbf16, #tpu.memory_space<vmem>>, vector<32x384xbf16>
    %c0_24 = arith.constant 0 : index
    %c0_25 = arith.constant 0 : index
    %68 = vector.load %arg2[%c0_24, %c0_25] : memref<384x128xbf16, #tpu.memory_space<vmem>>, vector<384x128xbf16>
    %cst_26 = arith.constant dense<0.000000e+00> : vector<32x128xf32>
    %69 = tpu.matmul %67, %68, %cst_26 {dimension_numbers = #tpu.dot_dimension_numbers<[1], [0], [0], [1], [0, 0, 1, 1], [], []>} : vector<32x384xbf16>, vector<384x128xbf16>, vector<32x128xf32> -> vector<32x128xf32>
    %c0_27 = arith.constant 0 : index
    %c0_28 = arith.constant 0 : index
    %70 = vector.load %arg6[%c0_27, %c0_28] : memref<1x128xf32, #tpu.memory_space<vmem>>, vector<1x128xf32>
    %71 = vector.broadcast %70 : vector<1x128xf32> to vector<32x128xf32>
    %72 = arith.addf %69, %71 : vector<32x128xf32>
    %cst_29 = arith.constant 0.000000e+00 : f32
    %73 = vector.broadcast %cst_29 : f32 to vector<32x128xf32>
    %74 = arith.maximumf %72, %73 : vector<32x128xf32>
    %75 = arith.truncf %74 : vector<32x128xf32> to vector<32x128xbf16>
    %c0_30 = arith.constant 0 : index
    %c128_31 = arith.constant 128 : index
    %76 = vector.load %arg8[%c0_30, %c128_31] : memref<32x384xbf16, #tpu.memory_space<vmem>>, vector<32x128xbf16>
    tpu.vector_store %arg8[%c0_30, %c128_31], %75 {strides = array<i32>} : memref<32x384xbf16, #tpu.memory_space<vmem>>, vector<32x128xbf16>,
    %77 = vector.extract_strided_slice %74 {offsets = [31, 0], sizes = [1, 128], strides = [1, 1]} : vector<32x128xf32> to vector<1x128xf32>
    %78 = vector.extract_strided_slice %74 {offsets = [0, 0], sizes = [31, 128], strides = [1, 1]} : vector<32x128xf32> to vector<31x128xf32>
    %79 = tpu.concatenate %77, %78 in 0 : vector<1x128xf32>, vector<31x128xf32> -> vector<32x128xf32>
    %cst_32 = arith.constant 0.000000e+00 : f32
    %80 = vector.shape_cast %20 : vector<32x1xi1> to vector<32x1xi1>
    %81 = vector.broadcast %80 : vector<32x1xi1> to vector<32x128xi1>
    %82 = vector.broadcast %cst_32 : f32 to vector<32x128xf32>
    %83 = arith.select %81, %79, %82 : vector<32x128xi1>, vector<32x128xf32>
    %84 = arith.truncf %83 : vector<32x128xf32> to vector<32x128xbf16>
    %c0_33 = arith.constant 0 : index
    %c0_34 = arith.constant 0 : index
    %85 = vector.load %arg8[%c0_33, %c0_34] : memref<32x384xbf16, #tpu.memory_space<vmem>>, vector<32x128xbf16>
    tpu.vector_store %arg8[%c0_33, %c0_34], %84 {strides = array<i32>} : memref<32x384xbf16, #tpu.memory_space<vmem>>, vector<32x128xbf16>,
    %86 = vector.extract_strided_slice %74 {offsets = [1, 0], sizes = [31, 128], strides = [1, 1]} : vector<32x128xf32> to vector<31x128xf32>
    %87 = vector.extract_strided_slice %74 {offsets = [0, 0], sizes = [1, 128], strides = [1, 1]} : vector<32x128xf32> to vector<1x128xf32>
    %88 = tpu.concatenate %86, %87 in 0 : vector<31x128xf32>, vector<1x128xf32> -> vector<32x128xf32>
    %cst_35 = arith.constant 0.000000e+00 : f32
    %89 = vector.shape_cast %38 : vector<32x1xi1> to vector<32x1xi1>
    %90 = vector.broadcast %89 : vector<32x1xi1> to vector<32x128xi1>
    %91 = vector.broadcast %cst_35 : f32 to vector<32x128xf32>
    %92 = arith.select %90, %88, %91 : vector<32x128xi1>, vector<32x128xf32>
    %93 = arith.truncf %92 : vector<32x128xf32> to vector<32x128xbf16>
    %c0_36 = arith.constant 0 : index
    %c256_37 = arith.constant 256 : index
    %94 = vector.load %arg8[%c0_36, %c256_37] : memref<32x384xbf16, #tpu.memory_space<vmem>>, vector<32x128xbf16>
    tpu.vector_store %arg8[%c0_36, %c256_37], %93 {strides = array<i32>} : memref<32x384xbf16, #tpu.memory_space<vmem>>, vector<32x128xbf16>,
    %c0_38 = arith.constant 0 : index
    %c0_39 = arith.constant 0 : index
    %95 = vector.load %arg8[%c0_38, %c0_39] : memref<32x384xbf16, #tpu.memory_space<vmem>>, vector<32x384xbf16>
    %c0_40 = arith.constant 0 : index
    %c0_41 = arith.constant 0 : index
    %96 = vector.load %arg3[%c0_40, %c0_41] : memref<384x128xbf16, #tpu.memory_space<vmem>>, vector<384x128xbf16>
    %cst_42 = arith.constant dense<0.000000e+00> : vector<32x128xf32>
    %97 = tpu.matmul %95, %96, %cst_42 {dimension_numbers = #tpu.dot_dimension_numbers<[1], [0], [0], [1], [0, 0, 1, 1], [], []>} : vector<32x384xbf16>, vector<384x128xbf16>, vector<32x128xf32> -> vector<32x128xf32>
    %98 = arith.addf %1, %97 : vector<32x128xf32>
    %c0_43 = arith.constant 0 : index
    %c0_44 = arith.constant 0 : index
    %c0_45 = arith.constant 0 : index
    %99 = vector.load %arg7[%c0_43, %c0_44, %c0_45] : memref<1x32x128xf32, #tpu.memory_space<vmem>>, vector<1x32x128xf32>
    %100 = vector.shape_cast %99 : vector<1x32x128xf32> to vector<32x128xf32>
    %101 = vector.shape_cast %98 : vector<32x128xf32> to vector<1x32x128xf32>
    tpu.vector_store %arg7[%c0_43, %c0_44, %c0_45], %101 {strides = array<i32>} : memref<1x32x128xf32, #tpu.memory_space<vmem>>, vector<1x32x128xf32>,
    return
  }
  func.func @transform_0(%arg0: i32) -> (i32, i32, i32) {
    %c0_i32 = arith.constant 0 : i32
    %c0_i32_0 = arith.constant 0 : i32
    %c0_i32_1 = arith.constant 0 : i32
    return %arg0, %c0_i32, %c0_i32_0 : i32, i32, i32
  }
  func.func @transform_1(%arg0: i32) -> (i32, i32) {
    %c0_i32 = arith.constant 0 : i32
    %c0_i32_0 = arith.constant 0 : i32
    %c0_i32_1 = arith.constant 0 : i32
    return %c0_i32, %c0_i32_0 : i32, i32
  }
  func.func @transform_2(%arg0: i32) -> (i32, i32) {
    %c0_i32 = arith.constant 0 : i32
    %c0_i32_0 = arith.constant 0 : i32
    %c0_i32_1 = arith.constant 0 : i32
    return %c0_i32, %c0_i32_0 : i32, i32
  }
  func.func @transform_3(%arg0: i32) -> (i32, i32) {
    %c0_i32 = arith.constant 0 : i32
    %c0_i32_0 = arith.constant 0 : i32
    %c0_i32_1 = arith.constant 0 : i32
    return %c0_i32, %c0_i32_0 : i32, i32
  }
  func.func @transform_4(%arg0: i32) -> (i32, i32) {
    %c0_i32 = arith.constant 0 : i32
    %c0_i32_0 = arith.constant 0 : i32
    %c0_i32_1 = arith.constant 0 : i32
    return %c0_i32, %c0_i32_0 : i32, i32
  }
  func.func @transform_5(%arg0: i32) -> (i32, i32) {
    %c0_i32 = arith.constant 0 : i32
    %c0_i32_0 = arith.constant 0 : i32
    %c0_i32_1 = arith.constant 0 : i32
    return %c0_i32, %c0_i32_0 : i32, i32
  }
  func.func @transform_6(%arg0: i32) -> (i32, i32, i32) {
    %c0_i32 = arith.constant 0 : i32
    %c0_i32_0 = arith.constant 0 : i32
    %c0_i32_1 = arith.constant 0 : i32
    return %arg0, %c0_i32, %c0_i32_0 : i32, i32, i32
  }
}

</mosaic_0001>

<bundles_post_ra>
// kernel: tpu_custom_call.1
= control target key start
LH: loop header
LB: loop body
LE: loop exit
PB: predicated region body
PF: predicated region fallthrough
CT: control target
= control target key end

     0   :  { %11 = vsyncpa [#allocation4], 0  ;;  %s1445_s0 = inlined_call_operand.hbm [shape: f32[1,32,128], index: 0, kind: input, shape index: {}]   ;;  %s1446_s1 = inlined_call_operand.hbm [shape: bf16[384,128], index: 1, kind: input, shape index: {}]   ;;  %s1447_s2 = inlined_call_operand.hbm [shape: bf16[384,128], index: 2, kind: input, shape index: {}]   ;;  %s1448_s3 = inlined_call_operand.vmem [shape: f32[1,128], index: 3, kind: input, shape index: {}]   ;;  %s1449_s4 = inlined_call_operand.vmem [shape: f32[1,128], index: 4, kind: input, shape index: {}]   ;;  %s1450_s5 = inlined_call_operand.vmem [shape: f32[1,128], index: 5, kind: input, shape index: {}]   ;;  %s1451_s6 = inlined_call_operand.hbm [shape: f32[1,32,128], index: 6, kind: output, shape index: {}]  }
   0x1   :  { %12 = vsyncpa [#allocation7], 0 }
   0x2   :  { %13 = vsyncpa [#allocation5], 0  ;;  %s1246_s21 = smov [#allocation6]   ;;  %s1152_s25 = scalar_lea.hbm %s1446_s1, 3072 }
   0x3   :  { %s31_s22 = sshll.u32 %s1246_s21, 4  ;;  %p1153_p0 = scmp.ne.s32.totalorder %s1446_s1, %s1152_s25  ;;  %s32_s22 = int_to_ptr.vmem [resolvable:$true] %s31_s22 }
   0x4   :  { %p1156_p1 = scmp.lt.u32.totalorder %s1152_s25, %s1446_s1 }
   0x6   :  { %p1158_p2 = pnand %p1156_p1, %p1153_p0 }
   0x8   :  { %1161 = shalt.err (!%p1158_p2)
}
   0x9   :  { %s1162_s30 = scalar_lea.vmem %s32_s22, 3072  ;;  %p1167_p4 = scmp.lt.s32.totalorder %s32_s22, %s32_s22 }
   0xa   :  { %p1163_p3 = scmp.ne.s32.totalorder %s32_s22, %s1162_s30  ;;  %p1168_p5 = scmp.lt.s32.totalorder %s1162_s30, %s1162_s30 }
   0xc   :  { %p1169_p6 = por %p1168_p5, %p1167_p4 }
   0xe   :  { %p1170_p7 = pnand %p1169_p6, %p1163_p3 }
  0x10   :  { %1173 = shalt.err (!%p1170_p7)
}
  0x11   :  { %s1247_s7 = smov 64   ;;  %s1248_s8 = smov 4  }
  0x12   :  { %37 = dma.hbm_to_vmem [thread:$0]  %s1446_s1, 3072, %s32_s22, [#allocation7], %s1247_s7, %s1247_s7, %s1248_s8  }
  0x13   :  { %s1249_s11 = smov [#allocation3]   ;;  %s1174_s15 = scalar_lea.hbm %s1445_s0, 512 }
  0x14   :  { %s19_s12 = sshll.u32 %s1249_s11, 4  ;;  %p1175_p8 = scmp.ne.s32.totalorder %s1445_s0, %s1174_s15  ;;  %s20_s12 = int_to_ptr.vmem [resolvable:$true] %s19_s12 }
  0x15   :  { %p1178_p9 = scmp.lt.u32.totalorder %s1174_s15, %s1445_s0 }
  0x17   :  { %p1180_p10 = pnand %p1178_p9, %p1175_p8 }
  0x19   :  { %1183 = shalt.err (!%p1180_p10)
}
  0x1a   :  { %s1184_s20 = scalar_lea.vmem %s20_s12, 512  ;;  %p1189_p12 = scmp.lt.s32.totalorder %s20_s12, %s20_s12 }
  0x1b   :  { %p1185_p11 = scmp.ne.s32.totalorder %s20_s12, %s1184_s20  ;;  %p1190_p13 = scmp.lt.s32.totalorder %s1184_s20, %s1184_s20 }
  0x1d   :  { %p1191_p0 = por %p1190_p13, %p1189_p12 }
  0x1f   :  { %p1192_p1 = pnand %p1191_p0, %p1185_p11 }
  0x21   :  { %1195 = shalt.err (!%p1192_p1)
}
  0x22   :  { %s1250_s1 = smov 128   ;;  %s1251_s21 = smov 8  }
  0x23   :  { %25 = dma.hbm_to_vmem [thread:$0]  %s1445_s0, 512, %s20_s12, [#allocation4], %s1250_s1, %s1250_s1, %s1251_s21  }
  0x24   :  { %s1252_s24 = smov [#allocation8]   ;;  %s1196_s28 = scalar_lea.hbm %s1447_s2, 3072 }
  0x25   :  { %s43_s25 = sshll.u32 %s1252_s24, 4  ;;  %p1197_p2 = scmp.ne.s32.totalorder %s1447_s2, %s1196_s28  ;;  %s44_s25 = int_to_ptr.vmem [resolvable:$true] %s43_s25 }
  0x26   :  { %p1200_p3 = scmp.lt.u32.totalorder %s1196_s28, %s1447_s2 }
  0x28   :  { %p1202_p4 = pnand %p1200_p3, %p1197_p2 }
  0x2a   :  { %1205 = shalt.err (!%p1202_p4)
}
  0x2b   :  { %s1206_s11 = scalar_lea.vmem %s44_s25, 3072  ;;  %p1211_p6 = scmp.lt.s32.totalorder %s44_s25, %s44_s25 }
  0x2c   :  { %p1207_p5 = scmp.ne.s32.totalorder %s44_s25, %s1206_s11  ;;  %p1212_p7 = scmp.lt.s32.totalorder %s1206_s11, %s1206_s11 }
  0x2e   :  { %p1213_p8 = por %p1212_p7, %p1211_p6 }
  0x30   :  { %p1214_p9 = pnand %p1213_p8, %p1207_p5 }
  0x32   :  { %1217 = shalt.err (!%p1214_p9)
}
  0x33   :  { %49 = dma.hbm_to_vmem [thread:$0]  %s1447_s2, 3072, %s44_s25, [#allocation7], %s1247_s7, %s1247_s7, %s1248_s8  }
  0x34   :  { %1240 = dma.done.wait [#allocation4], 512  }
  0x35   :  { %1241 = vsyncadd [#allocation4], 4294966784 }
  0x36   :  { %1242 = dma.done.wait [#allocation7], 6144  }
  0x37   :  { %1243 = vsyncadd [#allocation7], 4294961152  ;;  %v1104_v0 = vld [vmem:[#allocation6 + $0x40] sm:$0xff]   ;;  %v1106_v2 = vld [vmem:[#allocation6 + $0x48] sm:$0xff]   ;;  %v70_v13 = vlaneseq  ;;  %vm167_vm0 = vcmask 1040384   ;;  %vm1253_vm4 = vmmov 1  }
  0x38   :  { %v1105_v1 = vld [vmem:[#allocation6] sm:$0xff]   ;;  %979 = vmatprep.subr.bf16.mxu0 %v1104_v0  ;;  %v1108_v4 = vld [vmem:[#allocation6 + $0x8] sm:$0xff]   ;;  %v1109_v5 = vld [vmem:[#allocation6 + $0x50] sm:$0xff]   ;;  %vm195_vm6 = vcmask 1046528  }
  0x39   :  { %980 = vmatpush3.bf16.msra.mxu0 %v1105_v1  ;;  %v1107_v3 = vld [vmem:[#allocation6 + $0x80] sm:$0xff]   ;;  %v1110_v6 = vld [vmem:[#allocation6 + $0x88] sm:$0xff]   ;;  %v1111_v7 = vld [vmem:[#allocation6 + $0x10] sm:$0xff]   ;;  %v71_v17 = vshrl.u32 %v70_v13, 7 }
  0x3a   :  { %981 = vmatprep.subr.bf16.mxu0 %v1106_v2  ;;  %1055 = vmatprep.subr.bf16.mxu1 %v1107_v3  ;;  %v1112_v8 = vld [vmem:[#allocation6 + $0x58] sm:$0xff]   ;;  %v1113_v9 = vld [vmem:[#allocation6 + $0x90] sm:$0xff]   ;;  %v1115_v11 = vld [vmem:[#allocation6 + $0x60] sm:$0xff]  }
  0x3b   :  { %1056 = vmatpush3.bf16.msra.mxu1 %v1107_v3  ;;  %v1114_v10 = vld [vmem:[#allocation6 + $0x18] sm:$0xff]   ;;  %v1117_v14 = vld [vmem:[#allocation6 + $0x20] sm:$0xff]   ;;  %v1118_v16 = vld [vmem:[#allocation6 + $0x68] sm:$0xff]   ;;  %v72_v21 = vadd.s32 8, %v71_v17  ;;  %v74_v23 = vadd.s32 24, %v71_v17  ;;  %v73_v25 = vadd.s32 16, %v71_v17 }
  0x3c   :  { %1057 = vmatprep.subr.bf16.mxu1 %v1110_v6  ;;  %v1116_v12 = vld [vmem:[#allocation6 + $0x98] sm:$0xff]   ;;  %v1119_v15 = vld [vmem:[#allocation6 + $0xa0] sm:$0xff]   ;;  %v1120_v18 = vld [vmem:[#allocation6 + $0x28] sm:$0xff]   ;;  %v79_v29 = vand.u32 15, %v71_v17 }
  0x3d   :  { %982 = vmatpush3.bf16.msra.mxu0 %v1108_v4  ;;  %v1122_v19 = vld [vmem:[#allocation6 + $0xa8] sm:$0xff]   ;;  %v1121_v20 = vld [vmem:[#allocation6 + $0x70] sm:$0xff]   ;;  %v1335_v26 = vld [vmem:[#allocation3] sm:$0xff]  ;;  %v86_v33 = vand.u32 15, %v72_v21  ;;  %v100_v37 = vand.u32 15, %v74_v23  ;;  %v93_v39 = vand.u32 15, %v73_v25 }
  0x3e   :  { %983 = vmatprep.subr.bf16.mxu0 %v1109_v5  ;;  %v1123_v22 = vld [vmem:[#allocation6 + $0x30] sm:$0xff]   ;;  %v1337_v27 = vld [vmem:[#allocation3 + $0x8] sm:$0xff]  ;;  %v1339_v28 = vld [vmem:[#allocation3 + $0x18] sm:$0xff]  ;;  %vm123_vm1 = vcmp.ne.s32.totalorder %v79_v29, 0 }
  0x3f   :  { %1058 = vmatpush3.bf16.msra.mxu1 %v1110_v6  ;;  %v1125_v24 = vld [vmem:[#allocation6 + $0xb0] sm:$0xff]   ;;  %v1124_v30 = vld [vmem:[#allocation6 + $0x78] sm:$0xff]   ;;  %v904_v31 = vld [vmem:[%s1448_s3] ss:$0 sm:$0xff]  ;;  %vm1352_vm2 = vcmp.ne.s32.totalorder %v86_v33, 15  ;;  %vm1357_vm3 = vcmp.ne.s32.totalorder %v100_v37, 15 }
  0x40   :  { %1059 = vmatprep.subr.bf16.mxu1 %v1113_v9  ;;  %v905_v32 = vld [vmem:[%s1449_s4] ss:$0 sm:$0xff]  ;;  %v138_v34 = vmul.f32 %v904_v31, %v1335_v26  ;;  %v139_v35 = vmul.f32 %v904_v31, %v1337_v27  ;;  %v141_v36 = vmul.f32 %v904_v31, %v1339_v28  ;;  %v1350_v38 = vld [vmem:[#allocation3 + $0x10] sm:$0xff]  ;;  %v1126_v40 = vld [vmem:[#allocation6 + $0x38] sm:$0xff]   ;;  %vm1366_vm7 = vcmp.ne.s32.totalorder %v93_v39, 0 }
  0x41   :  { %984 = vmatpush3.bf16.msra.mxu0 %v1111_v7  ;;  %v1127_v44 = vld [vmem:[#allocation6 + $0xb8] sm:$0xff]   ;;  %v140_v46 = vmul.f32 %v904_v31, %v1350_v38  ;;  %v1128_v47 = vld [vmem:[#allocation8 + $0x40] sm:$0xff]   ;;  %vm1362_vm5 = vmpackc.low %vm1253_vm4, %vm123_vm1 }
  0x42   :  { %985 = vmatprep.subr.bf16.mxu0 %v1112_v8  ;;  %v149_v41 = vadd.f32 %v905_v32, %v138_v34  ;;  %v150_v42 = vadd.f32 %v905_v32, %v139_v35  ;;  %v152_v43 = vadd.f32 %v905_v32, %v141_v36  ;;  %vm1373_vm8 = vmpackc.low %vm1352_vm2, %vm1253_vm4  ;;  %v1129_v60 = vld [vmem:[#allocation8 + $0x80] sm:$0xff]   ;;  %v1135_v23 = vld [vmem:[#allocation8 + $0x90] sm:$0xff]  }
  0x43   :  { %1060 = vmatpush3.bf16.msra.mxu1 %v1113_v9  ;;  %v151_v53 = vadd.f32 %v905_v32, %v140_v46  ;;  %vm1380_vm9 = vmpackc.low %vm1357_vm3, %vm1253_vm4  ;;  %v1130_v9 = vld [vmem:[#allocation8] sm:$0xff]   ;;  %v1137_v25 = vld [vmem:[#allocation8 + $0x58] sm:$0xff]  }
  0x44   :  { %1061 = vmatprep.subr.bf16.mxu1 %v1116_v12  ;;  %v153_v48 = vmax.f32 %v149_v41, 0.0  ;;  %v154_v49 = vmax.f32 %v150_v42, 0.0  ;;  %v156_v50 = vmax.f32 %v152_v43, 0.0  ;;  %vm1389_vm10 = vmpackc.low %vm1253_vm4, %vm1366_vm7  ;;  %v1138_v29 = vld [vmem:[#allocation8 + $0x98] sm:$0xff]   ;;  %v1140_v31 = vld [vmem:[#allocation8 + $0x60] sm:$0xff]  }
  0x45   :  { %986 = vmatpush3.bf16.msra.mxu0 %v1114_v10  ;;  %v155_v61 = vmax.f32 %v151_v53, 0.0  ;;  %v1141_v32 = vld [vmem:[#allocation8 + $0xa0] sm:$0xff]   ;;  %v1143_v34 = vld [vmem:[#allocation8 + $0x68] sm:$0xff]   ;;  %v1146_v37 = vld [vmem:[#allocation8 + $0x70] sm:$0xff]  }
  0x46   :  { %987 = vmatprep.subr.bf16.mxu0 %v1115_v11  ;;  %v157_v55 = vpack.c.bf16 %v154_v49, %v153_v48  ;;  %v168_v56 = vrot.slane %v153_v48, 7  ;;  %v169_v57 = vrot.slane %v154_v49, 7  ;;  %v162_v58 = vrot.slane %v156_v50, 7  ;;  %v1142_v33 = vld [vmem:[#allocation8 + $0x20] sm:$0xff]   ;;  %v1144_v35 = vld [vmem:[#allocation8 + $0xa8] sm:$0xff]   ;;  %v1147_v39 = vld [vmem:[#allocation8 + $0xb0] sm:$0xff]  }
  0x47   :  { %1062 = vmatpush3.bf16.msra.mxu1 %v1116_v12  ;;  %v196_v62 = vrot.slane %v153_v48, 1  ;;  %v197_v63 = vrot.slane %v154_v49, 1  ;;  %v201_v0 = vrot.slane %v156_v50, 1  ;;  %v199_v7 = vrot.slane %v155_v61, 1  ;;  %v1131_v12 = vld [vmem:[#allocation8 + $0x48] sm:$0xff]   ;;  %v1149_v41 = vld [vmem:[#allocation8 + $0x78] sm:$0xff]  }
  0x48   :  { %1063 = vmatprep.subr.bf16.mxu1 %v1119_v15  ;;  %462 = vmatprep.mubr.bf16.mxu0 %v157_v55  ;;  %v170_v2 = vsel %vm167_vm0, %v168_v56, %v169_v57  ;;  %v178_v3 = vsel %vm167_vm0, %v162_v58, %v168_v56  ;;  %v158_v10 = vpack.c.bf16 %v156_v50, %v155_v61  ;;  %v171_v11 = vrot.slane %v155_v61, 7  ;;  %v1145_v36 = vld [vmem:[#allocation8 + $0x28] sm:$0xff]   ;;  %v1150_v42 = vld [vmem:[#allocation8 + $0xb8] sm:$0xff]   ;;  %v906_v46 = vld [vmem:[%s1450_s5] ss:$0 sm:$0xff]  ;;  %s1254_s5 = smov [#allocation9]  }
  0x49   :  { %988 = vmatpush3.bf16.msra.mxu0 %v1117_v14  ;;  %v956_v5 = vpack.c.bf16 %v170_v2, %v178_v3  ;;  %v198_v6 = vsel %vm195_vm6, %v196_v62, %v197_v63  ;;  %v208_v8 = vsel %vm195_vm6, %v201_v0, %v196_v62  ;;  %v200_v13 = vsel %vm195_vm6, %v197_v63, %v199_v7  ;;  %v1151_v43 = vld [vmem:[#allocation8 + $0x38] sm:$0xff]   ;;  %s891_s14 = sshll.u32 %s1254_s5, 4  ;;  %s892_s14 = int_to_ptr.vmem [resolvable:$true] %s891_s14 }
  0x4a   :  { %989 = vmatprep.subr.bf16.mxu0 %v1118_v16  ;;  %v202_v14 = vsel %vm195_vm6, %v199_v7, %v201_v0  ;;  %v1133_v16 = vld [vmem:[#allocation8 + $0x8] sm:$0xff]   ;;  %v962_v17 = vpack.c.bf16 %v200_v13, %v198_v6  ;;  %s1218_s15 = scalar_lea.vmem %s892_s14, 512  ;;  %p1223_p11 = scmp.lt.s32.totalorder %s892_s14, %s892_s14 }
  0x4b   :  { %1064 = vmatpush3.bf16.msra.mxu1 %v1119_v15  ;;  %v1132_v15 = vld [vmem:[#allocation8 + $0x88] sm:$0xff]   ;;  %p1219_p10 = scmp.ne.s32.totalorder %s892_s14, %s1218_s15  ;;  %p1224_p12 = scmp.lt.s32.totalorder %s1218_s15, %s1218_s15 }
  0x4c   :  { %1065 = vmatprep.subr.bf16.mxu1 %v1122_v19  ;;  %1071 = vmatprep.mubr.msk.bf16.mxu1 %vm1373_vm8, %v962_v17 }
  0x4d   :  { %990 = vmatpush3.bf16.msra.mxu0 %v1120_v18  ;;  %v965_v18 = vpack.c.bf16 %v208_v8, %v202_v14  ;;  %p1225_p13 = por %p1224_p12, %p1223_p11 }
  0x4e   :  { %991 = vmatprep.subr.bf16.mxu0 %v1121_v20  ;;  %v173_v20 = vsel %vm167_vm0, %v171_v11, %v162_v58 }
  0x4f   :  { %1066 = vmatpush3.bf16.msra.mxu1 %v1122_v19  ;;  %v172_v19 = vsel %vm167_vm0, %v169_v57, %v171_v11  ;;  %p1226_p0 = pnand %p1225_p13, %p1219_p10 }
  0x50   :  { %1067 = vmatprep.subr.bf16.mxu1 %v1125_v24  ;;  %v959_v21 = vpack.c.bf16 %v173_v20, %v172_v19 }
  0x51   :  { %992 = vmatpush3.bf16.msra.mxu0 %v1123_v22  ;;  %v1134_v22 = vld [vmem:[#allocation8 + $0x50] sm:$0xff]  }
  0x52   :  { %993 = vmatprep.subr.bf16.mxu0 %v1124_v30  ;;  %v1139_v30 = vld [vmem:[#allocation8 + $0x18] sm:$0xff]  }
  0x53   :  { %1068 = vmatpush3.bf16.msra.mxu1 %v1125_v24  ;;  %v1136_v24 = vld [vmem:[#allocation8 + $0x10] sm:$0xff]  }
  0x54   :  { %1069 = vmatprep.subr.bf16.mxu1 %v1127_v44 }
  0x55   :  { %994 = vmatpush3.bf16.msra.mxu0 %v1126_v40  ;;  %v1148_v40 = vld [vmem:[#allocation8 + $0x30] sm:$0xff]  }
  0x56   :  { %1017 = vmatprep.subr.bf16.mxu0 %v1128_v47 }
  0x57   :  { %1070 = vmatpush3.bf16.msra.mxu1 %v1127_v44 }
  0x58   :  { %1075 = vmatprep.subr.bf16.mxu1 %v1129_v60  ;;  %957 = vmatmul.mubr.msk.bf16.vlgmr.msra.gmra.mrb[0].mxu0 %vm1362_vm5, %v956_v5 }
  0x59   :  { %470 = vmatprep.mubr.bf16.mxu0 %v158_v10  ;;  %1018 = vmatpush3.bf16.msra.mxu0 %v1130_v9 }
  0x5a   :  { %1019 = vmatprep.subr.bf16.mxu0 %v1131_v12  ;;  %1072 = vmatmul.mubr.msk.bf16.vlgmr.msra.gmra.mrb[0].mxu1 %vm1380_vm9, %v965_v18 }
  0x5b   :  { %1076 = vmatpush3.bf16.msra.mxu1 %v1129_v60 }
  0x5c   :  { %1077 = vmatprep.subr.bf16.mxu1 %v1132_v15 }
  0x5d   :  { %1020 = vmatpush3.bf16.msra.mxu0 %v1133_v16 }
  0x5e   :  { %1021 = vmatprep.subr.bf16.mxu0 %v1134_v22 }
  0x5f   :  { %1078 = vmatpush3.bf16.msra.mxu1 %v1132_v15 }
  0x60   :  { %960 = vmatmul.mubr.msk.bf16.gmra.mrb[4].mxu0 %vm1389_vm10, %v959_v21  ;;  %1079 = vmatprep.subr.bf16.mxu1 %v1135_v23 }
  0x61   :  { %1022 = vmatpush3.bf16.msra.mxu0 %v1136_v24 }
  0x62   :  { %1023 = vmatprep.subr.bf16.mxu0 %v1137_v25 }
  0x63   :  { %1080 = vmatpush3.bf16.msra.mxu1 %v1135_v23 }
  0x64   :  { %1081 = vmatprep.subr.bf16.mxu1 %v1138_v29 }
  0x65   :  { %1024 = vmatpush3.bf16.msra.mxu0 %v1139_v30 }
  0x66   :  { %1025 = vmatprep.subr.bf16.mxu0 %v1140_v31 }
  0x67   :  { %1082 = vmatpush3.bf16.msra.mxu1 %v1138_v29 }
  0x68   :  { %1083 = vmatprep.subr.bf16.mxu1 %v1141_v32 }
  0x69   :  { %1026 = vmatpush3.bf16.msra.mxu0 %v1142_v33 }
  0x6a   :  { %1027 = vmatprep.subr.bf16.mxu0 %v1143_v34 }
  0x6b   :  { %1084 = vmatpush3.bf16.msra.mxu1 %v1141_v32 }
  0x6c   :  { %1085 = vmatprep.subr.bf16.mxu1 %v1144_v35 }
  0x6d   :  { %1028 = vmatpush3.bf16.msra.mxu0 %v1145_v36 }
  0x6e   :  { %1029 = vmatprep.subr.bf16.mxu0 %v1146_v37 }
  0x6f   :  { %1086 = vmatpush3.bf16.msra.mxu1 %v1144_v35 }
  0x70   :  { %1087 = vmatprep.subr.bf16.mxu1 %v1147_v39 }
  0x71   :  { %1030 = vmatpush3.bf16.msra.mxu0 %v1148_v40 }
  0x72   :  { %1031 = vmatprep.subr.bf16.mxu0 %v1149_v41 }
  0x73   :  { %1088 = vmatpush3.bf16.msra.mxu1 %v1147_v39 }
  0x74   :  { %1089 = vmatprep.subr.bf16.mxu1 %v1150_v42 }
  0x75   :  { %1032 = vmatpush3.bf16.msra.mxu0 %v1151_v43 }
  0x77   :  { %1090 = vmatpush3.bf16.msra.mxu1 %v1150_v42 }
 0x12b   :  { %v995_v44 = vpop.f32.mrb[0].mxu0 }
 0x12c   :  { %v996_v45 = vpop.f32.mrb[1].mxu0 }
 0x12d   :  { %v997_v47 = vadd.f32 %v996_v45, %v995_v44  ;;  %v998_v48 = vpop.f32.mrb[2].mxu0  ;;  %v1073_v51 = vpop.f32.mrb[0].mxu1 }
 0x12e   :  { %v999_v49 = vpop.f32.mrb[3].mxu0  ;;  %v513_v54 = vpop.f32.mrb[1].mxu1 }
 0x12f   :  { %v1000_v50 = vadd.f32 %v999_v49, %v998_v48  ;;  %v465_v53 = vadd.f32 %v997_v47, %v906_v46  ;;  %v1074_v56 = vpop.f32.mrb[2].mxu1 }
 0x130   :  { %v516_v58 = vpop.f32.mrb[3].mxu1 }
 0x131   :  { %v514_v55 = vadd.f32 %v513_v54, %v465_v53  ;;  %v468_v57 = vadd.f32 %v1000_v50, %v906_v46 }
 0x133   :  { %v528_v60 = vmax.f32 %v514_v55, 0.0  ;;  %v517_v61 = vadd.f32 %v516_v58, %v468_v57  ;;  %v1001_v62 = vpop.f32.mrb[4].mxu0 }
 0x134   :  { %v1002_v63 = vpop.f32.mrb[5].mxu0 }
 0x135   :  { %v529_v0 = vmax.f32 %v517_v61, 0.0  ;;  %v1003_v2 = vadd.f32 %v1002_v63, %v1001_v62  ;;  %v1004_v3 = vpop.f32.mrb[6].mxu0  ;;  %v542_v5 = vrot.slane %v528_v60, 7  ;;  %v561_v6 = vrot.slane %v528_v60, 1 }
 0x136   :  { %v1005_v7 = vpop.f32.mrb[7].mxu0 }
 0x137   :  { %v543_v8 = vrot.slane %v529_v0, 7  ;;  %v562_v9 = vrot.slane %v529_v0, 1  ;;  %v473_v10 = vadd.f32 %v1003_v2, %v906_v46  ;;  %v1006_v11 = vadd.f32 %v1005_v7, %v1004_v3 }
 0x138   :  { %v532_v12 = vpack.c.bf16 %v529_v0, %v528_v60 }
 0x139   :  { %v544_v13 = vsel %vm167_vm0, %v542_v5, %v543_v8  ;;  %v522_v14 = vadd.f32 %v1073_v51, %v473_v10  ;;  %v476_v15 = vadd.f32 %v1006_v11, %v906_v46  ;;  %v563_v16 = vsel %vm195_vm6, %v561_v6, %v562_v9 }
 0x13a   :  { %812 = vmatprep.mubr.bf16.mxu0 %v532_v12 }
 0x13b   :  { %v530_v17 = vmax.f32 %v522_v14, 0.0  ;;  %v525_v18 = vadd.f32 %v1074_v56, %v476_v15 }
 0x13d   :  { %v545_v19 = vrot.slane %v530_v17, 7  ;;  %v564_v20 = vrot.slane %v530_v17, 1  ;;  %v531_v21 = vmax.f32 %v525_v18, 0.0 }
 0x13f   :  { %v537_v22 = vrot.slane %v531_v21, 7  ;;  %v566_v23 = vrot.slane %v531_v21, 1  ;;  %v565_v24 = vsel %vm195_vm6, %v562_v9, %v564_v20  ;;  %v533_v25 = vpack.c.bf16 %v531_v21, %v530_v17 }
 0x140   :  { %v974_v29 = vpack.c.bf16 %v565_v24, %v563_v16  ;;  %v546_v30 = vsel %vm167_vm0, %v543_v8, %v545_v19 }
 0x141   :  { %v552_v31 = vsel %vm167_vm0, %v537_v22, %v542_v5  ;;  %v567_v32 = vsel %vm195_vm6, %v564_v20, %v566_v23  ;;  %v573_v33 = vsel %vm195_vm6, %v566_v23, %v561_v6  ;;  %v547_v34 = vsel %vm167_vm0, %v545_v19, %v537_v22 }
 0x142   :  { %v968_v35 = vpack.c.bf16 %v544_v13, %v552_v31  ;;  %1091 = vmatprep.mubr.msk.bf16.mxu1 %vm1373_vm8, %v974_v29  ;;  %v977_v36 = vpack.c.bf16 %v573_v33, %v567_v32  ;;  %v971_v37 = vpack.c.bf16 %v547_v34, %v546_v30 }
 0x144   :  { %969 = vmatmul.mubr.msk.bf16.vlgmr.msra.gmra.mrb[8].mxu0 %vm1362_vm5, %v968_v35  ;;  %1092 = vmatmul.mubr.msk.bf16.vlgmr.msra.gmra.mrb[4].mxu1 %vm1380_vm9, %v977_v36 }
 0x145   :  { %820 = vmatprep.mubr.bf16.mxu0 %v533_v25 }
 0x14c   :  { %972 = vmatmul.mubr.msk.bf16.gmra.mrb[12].mxu0 %vm1389_vm10, %v971_v37 }
 0x217   :  { %v1033_v39 = vpop.f32.mrb[8].mxu0  ;;  %v1093_v40 = vpop.f32.mrb[4].mxu1 }
 0x218   :  { %v1034_v41 = vpop.f32.mrb[9].mxu0  ;;  %v863_v42 = vpop.f32.mrb[5].mxu1 }
 0x219   :  { %v1035_v43 = vadd.f32 %v1034_v41, %v1033_v39  ;;  %v1036_v44 = vpop.f32.mrb[10].mxu0  ;;  %v1094_v59 = vpop.f32.mrb[6].mxu1 }
 0x21a   :  { %v1037_v45 = vpop.f32.mrb[11].mxu0  ;;  %v866_v46 = vpop.f32.mrb[7].mxu1 }
 0x21b   :  { %v864_v47 = vadd.f32 %v1035_v43, %v863_v42  ;;  %v1038_v48 = vadd.f32 %v1037_v45, %v1036_v44 }
 0x21d   :  { %v878_v52 = vadd.f32 %v864_v47, %v1335_v26  ;;  %v867_v49 = vadd.f32 %v1038_v48, %v866_v46 }
 0x21f   :  { %882 = vst [vmem:[#allocation9] sm:$0xff] %v878_v52  ;;  %v879_v1 = vadd.f32 %v867_v49, %v1337_v27  ;;  %v1039_v50 = vpop.f32.mrb[12].mxu0 }
 0x220   :  { %v1040_v4 = vpop.f32.mrb[13].mxu0 }
 0x221   :  { %883 = vst [vmem:[#allocation9 + $0x8] sm:$0xff] %v879_v1  ;;  %v1041_v51 = vadd.f32 %v1040_v4, %v1039_v50  ;;  %v1042_v53 = vpop.f32.mrb[14].mxu0 }
 0x222   :  { %v1043_v54 = vpop.f32.mrb[15].mxu0 }
 0x223   :  { %v872_v55 = vadd.f32 %v1093_v40, %v1041_v51  ;;  %v1044_v56 = vadd.f32 %v1043_v54, %v1042_v53 }
 0x225   :  { %v880_v57 = vadd.f32 %v872_v55, %v1350_v38  ;;  %v875_v58 = vadd.f32 %v1094_v59, %v1044_v56 }
 0x227   :  { %884 = vst [vmem:[#allocation9 + $0x10] sm:$0xff] %v880_v57  ;;  %v881_v26 = vadd.f32 %v875_v58, %v1339_v28 }
 0x229   :  { %885 = vst [vmem:[#allocation9 + $0x18] sm:$0xff] %v881_v26 }
 0x22a   :  { %1229 = shalt.err (!%p1226_p0)
}
 0x22b   :  { %s1230_s18 = scalar_lea.hbm %s1451_s6, 512 }
 0x22c   :  { %p1231_p1 = scmp.ne.s32.totalorder %s1451_s6, %s1230_s18  ;;  %p1234_p2 = scmp.lt.u32.totalorder %s1230_s18, %s1451_s6 }
 0x22e   :  { %p1236_p3 = pnand %p1234_p2, %p1231_p1 }
 0x230   :  { %1239 = shalt.err (!%p1236_p3)
}
 0x231   :  { %897 = dma.vmem_to_hbm [thread:$0]  %s892_s14, 512, %s1451_s6, [#allocation5], %s1250_s1, %s1250_s1, %s1251_s21  }
 0x232   :  { %1244 = dma.done.wait [#allocation5], 512  }
 0x233   :  { %1245 = vsyncadd [#allocation5], 4294966784 }
 0x234   :  { %901 = vsyncpa [#allocation4], 1 }
 0x235   :  { %902 = vsyncpa [#allocation7], 1 }
 0x236   :  { %903 = vsyncpa [#allocation5], 1 }

</bundles_post_ra>
